<compile_context>
chip_gen: v6e
topology: v6e:2x2x1
jax: 0.10.0
libtpu: 0.0.40
codegen_flags: <defaults>
</compile_context>

<pallas_src>
import functools

import jax
import jax.numpy as jnp
from jax import lax
from jax.experimental import pallas as pl
from jax.experimental.pallas import tpu as pltpu

_MIB = 1024 * 1024


def _tpu_params():
    """Best-effort hardware query: (physical VMEM bytes, TensorCores per chip).

    Falls back to the most conservative assumption (64 MiB VMEM, 1 core) so the
    kernel always compiles even if the query API is unavailable.
    """
    vmem_bytes = 64 * _MIB
    num_cores = 1
    try:
        info = pltpu.get_tpu_info()
        for name in ("vmem_capacity_bytes", "vmem_bytes", "vmem_size_bytes"):
            v = getattr(info, name, None)
            if v:
                vmem_bytes = int(v)
                break
        for name in ("num_cores", "tensorcore_count", "num_tensorcores",
                     "core_count"):
            v = getattr(info, name, None)
            if v:
                num_cores = int(v)
                break
    except Exception:
        pass
    try:
        kind = jax.devices()[0].device_kind.lower()
        if "v7" in kind:
            num_cores = max(num_cores, 2)   # v7x: 2 TensorCores per chip
    except Exception:
        pass
    return vmem_bytes, num_cores


def _pick_tile_k(D, B, itemsize, tile_k, vmem_bytes):
    """Pick the lane-dim (D) tile.

    Sized from TRUE HBM bytes per step (B rows, not the sublane-padded row
    count), with a separate cap on the padded per-buffer VMEM footprint so the
    pipeline buffers fit the chip generation's VMEM.
    """
    sub = 8 * max(1, 4 // itemsize)              # sublane pack factor
    b_pad = ((B + sub - 1) // sub) * sub         # padded rows of a VMEM tile
    if tile_k is None:
        if vmem_bytes >= 96 * _MIB:              # v5e / v6e: 128 MiB VMEM
            target_hbm = 4 * _MIB                # true HBM bytes per input/step
            buf_cap = 12 * _MIB                  # padded VMEM bytes per buffer
        else:                                    # v7x (or unknown): 64 MiB VMEM
            target_hbm = 2 * _MIB
            buf_cap = 6 * _MIB
        tk_hbm = target_hbm // max(1, B * itemsize)
        tk_vmem = buf_cap // max(1, b_pad * itemsize)
        tile_k = min(tk_hbm, tk_vmem)
    tile_k = max(128, (tile_k // 128) * 128)
    if tile_k >= D:
        return D, b_pad                          # single full-row tile, no masking
    return tile_k, b_pad


@functools.partial(jax.jit,
                   static_argnames=("tile_k", "n_cores", "vmem_limit"))
def _batch_sim_loss_impl(f_src, f_tgt, *, tile_k, n_cores, vmem_limit):
    B, D = f_src.shape
    n_k = pl.cdiv(D, tile_k)
    ragged = (D % tile_k) != 0                   # last tile has garbage tail cols
    k_per_core = pl.cdiv(n_k, n_cores)
    grid_padded = n_cores * k_per_core > n_k

    # f32 inputs: full-precision MXU passes (hidden under the HBM stream, and
    # numerically matches a true f32 Gram).  bf16 keeps the native feed.
    precision = (lax.Precision.HIGHEST
                 if f_src.dtype == jnp.float32 else None)

    def in_index(c, k):
        t = c * k_per_core + k
        if grid_padded:
            t = jnp.minimum(t, n_k - 1)          # keep DMA in bounds; step skipped
        return (0, t)

    def kernel(fs_ref, ft_ref, a_src_ref, a_tgt_ref):
        c = pl.program_id(0)
        k = pl.program_id(1)

        @pl.when(k == 0)
        def _init():
            a_src_ref[...] = jnp.zeros_like(a_src_ref)
            a_tgt_ref[...] = jnp.zeros_like(a_tgt_ref)

        t = c * k_per_core + k                   # global D-tile index
        dims = (((1,), (1,)), ((), ()))          # contract over D; no materialized .T

        def accumulate(fs, ft):
            a_src_ref[...] += lax.dot_general(
                fs, fs, dims, preferred_element_type=jnp.float32,
                precision=precision)
            a_tgt_ref[...] += lax.dot_general(
                ft, ft, dims, preferred_element_type=jnp.float32,
                precision=precision)

        def step():
            if not ragged:
                accumulate(fs_ref[...], ft_ref[...])
            else:
                # Masking runs ONLY on the final D tile; every other step takes
                # the unmasked fast path (no extra elementwise pass stealing
                # vld/vst slots from the MXU feed).
                @pl.when(t != n_k - 1)
                def _fast():
                    accumulate(fs_ref[...], ft_ref[...])

                @pl.when(t == n_k - 1)
                def _masked():
                    col = t * tile_k + lax.broadcasted_iota(
                        jnp.int32, (1, tile_k), 1)
                    valid = col < D
                    fs = jnp.where(valid, fs_ref[...],
                                   jnp.zeros((), fs_ref.dtype))
                    ft = jnp.where(valid, ft_ref[...],
                                   jnp.zeros((), ft_ref.dtype))
                    accumulate(fs, ft)

        if grid_padded:
            pl.when(t < n_k)(step)
        else:
            step()

    part_src, part_tgt = pl.pallas_call(
        kernel,
        out_shape=(
            jax.ShapeDtypeStruct((n_cores, B, B), jnp.float32),
            jax.ShapeDtypeStruct((n_cores, B, B), jnp.float32),
        ),
        grid_spec=pltpu.PrefetchScalarGridSpec(
            num_scalar_prefetch=0,
            grid=(n_cores, k_per_core),
            in_specs=[
                pl.BlockSpec((B, tile_k), in_index),
                pl.BlockSpec((B, tile_k), in_index),
            ],
            out_specs=[
                pl.BlockSpec((None, B, B), lambda c, k: (c, 0, 0)),
                pl.BlockSpec((None, B, B), lambda c, k: (c, 0, 0)),
            ],
        ),
        compiler_params=pltpu.CompilerParams(
            # "parallel" on the leading size-n_cores axis engages megacore
            # sharding on multi-TensorCore chips (P9); on 1-TC chips it just
            # serializes.  TODO(synk): verify on v7x that the 2-way split
            # actually engages; switch to pltpu.CORE_PARALLEL if an xprof
            # trace shows it does not.
            dimension_semantics=("parallel", "arbitrary"),
            vmem_limit_bytes=vmem_limit,
        ),
    )(f_src, f_tgt)

    # Cold path: O(B^2) finalize == F.normalize(p=2, dim=1) + ||.||_F^2 / B.
    A_src = jnp.sum(part_src, axis=0)
    A_tgt = jnp.sum(part_tgt, axis=0)
    eps = jnp.float32(1e-12)
    n_src = jnp.sqrt(jnp.sum(A_src * A_src, axis=1, keepdims=True))
    n_tgt = jnp.sqrt(jnp.sum(A_tgt * A_tgt, axis=1, keepdims=True))
    diff = A_src / jnp.maximum(n_src, eps) - A_tgt / jnp.maximum(n_tgt, eps)
    return jnp.sum(diff * diff) / jnp.float32(B)


def batch_sim_loss(featmap_src_T, featmap_tgt_S, tile_k=None, n_cores=None):
    """JAX/Pallas equivalent of BatchSimLoss.forward (returns a scalar f32)."""
    B, C, H, W = featmap_src_T.shape
    D = C * H * W
    f_src = featmap_src_T.reshape(B, D)          # free reshape; native dtype kept
    f_tgt = featmap_tgt_S.reshape(B, D)

    vmem_bytes, hw_cores = _tpu_params()
    itemsize = jnp.dtype(f_src.dtype).itemsize
    tile_k, b_pad = _pick_tile_k(D, B, itemsize, tile_k, vmem_bytes)
    n_k = pl.cdiv(D, tile_k)

    # Split the D reduction across TensorCores only on chips that actually have
    # more than one (v7x); 1-TC chips get a simple grid with no padded-grid
    # skip machinery and no wrapper-side partial-sum work.
    if n_cores is None:
        n_cores = hw_cores
    n_cores = max(1, min(int(n_cores), int(n_k)))

    # VMEM budget: pipeline buffers + last-tile mask temporaries + accumulators.
    tile_bytes = b_pad * tile_k * itemsize
    out_bytes = (((B + 7) // 8) * 8) * max(128, ((B + 127) // 128) * 128) * 4
    vmem_need = (4 * tile_bytes                  # 2 inputs x double buffer
                 + 2 * tile_bytes                # masked-tail temporaries
                 + 4 * out_bytes                 # 2 accumulators (dbl-buffered)
                 + 4 * _MIB)                     # compiler scratch headroom
    vmem_cap = 96 * _MIB if vmem_bytes >= 96 * _MIB else 48 * _MIB
    vmem_limit = int(min(vmem_cap, max(32 * _MIB, vmem_need)))

    return _batch_sim_loss_impl(f_src, f_tgt, tile_k=int(tile_k),
                                n_cores=int(n_cores), vmem_limit=vmem_limit)


def _reference(featmap_src_T, featmap_tgt_S):
    """Pure-JAX reference mirroring BatchSimLoss.forward (full f32 precision)."""
    B = featmap_src_T.shape[0]
    hp = lax.Precision.HIGHEST
    f_src = featmap_src_T.reshape(B, -1).astype(jnp.float32)
    f_tgt = featmap_tgt_S.reshape(B, -1).astype(jnp.float32)
    A_src = jnp.matmul(f_src, f_src.T, precision=hp)
    A_tgt = jnp.matmul(f_tgt, f_tgt.T, precision=hp)
    A_src = A_src / jnp.maximum(
        jnp.linalg.norm(A_src, axis=1, keepdims=True), 1e-12)
    A_tgt = A_tgt / jnp.maximum(
        jnp.linalg.norm(A_tgt, axis=1, keepdims=True), 1e-12)
    return jnp.sum((A_src - A_tgt) ** 2) / B


if __name__ == "__main__":
    key = jax.random.PRNGKey(0)
    k1, k2, k3, k4 = jax.random.split(key, 4)

    # Case 1: single-tile fast path (D <= auto tile_k), auto core count.
    B, C, H, W = 2, 4, 16, 16
    featmap_src_T = jax.random.normal(k1, (B, C, H, W), dtype=jnp.float32)
    featmap_tgt_S = jax.random.normal(k2, (B, C, H, W), dtype=jnp.float32)
    loss = batch_sim_loss(featmap_src_T, featmap_tgt_S)
    jax.block_until_ready(loss)
    ref = _reference(featmap_src_T, featmap_tgt_S)
    assert jnp.allclose(loss, ref, rtol=1e-4, atol=1e-5), (loss, ref)

    # Case 2: forced small tile + forced 2-way core split to exercise the
    # multi-tile reduction, the padded-grid skip path, and the last-tile-only
    # ragged masking (D = 3*11*11 = 363 -> n_k = 3 tiles of 128, grid (2, 2)).
    B2, C2, H2, W2 = 3, 3, 11, 11
    src2 = jax.random.normal(k3, (B2, C2, H2, W2), dtype=jnp.float32)
    tgt2 = jax.random.normal(k4, (B2, C2, H2, W2), dtype=jnp.float32)
    loss2 = batch_sim_loss(src2, tgt2, tile_k=128, n_cores=2)
    jax.block_until_ready(loss2)
    ref2 = _reference(src2, tgt2)
    assert jnp.allclose(loss2, ref2, rtol=1e-4, atol=1e-5), (loss2, ref2)

    print("KERNEL_OK")
</pallas_src>

<mosaic_0001>
module attributes {stable_mosaic.version = 11 : i64} {
  func.func @kernel(%arg0: i32, %arg1: i32, %arg2: memref<2x1024xf32, #tpu.memory_space<vmem>>, %arg3: memref<2x1024xf32, #tpu.memory_space<vmem>>, %arg4: memref<1x2x2xf32, #tpu.memory_space<vmem>>, %arg5: memref<1x2x2xf32, #tpu.memory_space<vmem>>) attributes {dimension_semantics = [#tpu.dimension_semantics<parallel>, #tpu.dimension_semantics<arbitrary>], iteration_bounds = array<i64: 1, 1>, scalar_prefetch = 0 : i64, scratch_operands = 0 : i64, tpu.core_type = #tpu.core_type<tc>, window_params = [{transform_indices = @transform_0, window_bounds = array<i64: 2, 1024>}, {transform_indices = @transform_1, window_bounds = array<i64: 2, 1024>}, {transform_indices = @transform_2, window_bounds = array<i64: 1, 2, 2>}, {transform_indices = @transform_3, window_bounds = array<i64: 1, 2, 2>}]} {
    %c0_i32 = arith.constant 0 : i32
    %0 = arith.cmpi eq, %arg1, %c0_i32 : i32
    %1 = arith.extui %0 : i1 to i32
    %c0_i32_0 = arith.constant 0 : i32
    %2 = arith.cmpi ne, %1, %c0_i32_0 : i32
    scf.if %2 {
      %cst_17 = arith.constant 0.000000e+00 : f32
      %19 = vector.broadcast %cst_17 : f32 to vector<2x2xf32>
      %c0_18 = arith.constant 0 : index
      %c0_19 = arith.constant 0 : index
      %c0_20 = arith.constant 0 : index
      %20 = vector.load %arg4[%c0_18, %c0_19, %c0_20] : memref<1x2x2xf32, #tpu.memory_space<vmem>>, vector<1x2x2xf32>
      %21 = vector.shape_cast %20 : vector<1x2x2xf32> to vector<2x2xf32>
      %22 = vector.shape_cast %19 : vector<2x2xf32> to vector<1x2x2xf32>
      tpu.vector_store %arg4[%c0_18, %c0_19, %c0_20], %22 {strides = array<i32>} : memref<1x2x2xf32, #tpu.memory_space<vmem>>, vector<1x2x2xf32>,
      %cst_21 = arith.constant 0.000000e+00 : f32
      %23 = vector.broadcast %cst_21 : f32 to vector<2x2xf32>
      %c0_22 = arith.constant 0 : index
      %c0_23 = arith.constant 0 : index
      %c0_24 = arith.constant 0 : index
      %24 = vector.load %arg5[%c0_22, %c0_23, %c0_24] : memref<1x2x2xf32, #tpu.memory_space<vmem>>, vector<1x2x2xf32>
      %25 = vector.shape_cast %24 : vector<1x2x2xf32> to vector<2x2xf32>
      %26 = vector.shape_cast %23 : vector<2x2xf32> to vector<1x2x2xf32>
      tpu.vector_store %arg5[%c0_22, %c0_23, %c0_24], %26 {strides = array<i32>} : memref<1x2x2xf32, #tpu.memory_space<vmem>>, vector<1x2x2xf32>,
    } else {
    }
    %c0 = arith.constant 0 : index
    %c0_1 = arith.constant 0 : index
    %3 = vector.load %arg2[%c0, %c0_1] : memref<2x1024xf32, #tpu.memory_space<vmem>>, vector<2x1024xf32>
    %c0_2 = arith.constant 0 : index
    %c0_3 = arith.constant 0 : index
    %4 = vector.load %arg3[%c0_2, %c0_3] : memref<2x1024xf32, #tpu.memory_space<vmem>>, vector<2x1024xf32>
    %c0_4 = arith.constant 0 : index
    %c0_5 = arith.constant 0 : index
    %c0_6 = arith.constant 0 : index
    %5 = vector.load %arg4[%c0_4, %c0_5, %c0_6] : memref<1x2x2xf32, #tpu.memory_space<vmem>>, vector<1x2x2xf32>
    %6 = vector.shape_cast %5 : vector<1x2x2xf32> to vector<2x2xf32>
    %cst = arith.constant dense<0.000000e+00> : vector<2x2xf32>
    %7 = tpu.matmul %3, %3, %cst {dimension_numbers = #tpu.dot_dimension_numbers<[1], [1], [0], [0], [0, 0, 1, 0], [], []>, precision = #tpu.contract_precision<fp32>} : vector<2x1024xf32>, vector<2x1024xf32>, vector<2x2xf32> -> vector<2x2xf32>
    %8 = arith.addf %6, %7 : vector<2x2xf32>
    %c0_7 = arith.constant 0 : index
    %c0_8 = arith.constant 0 : index
    %c0_9 = arith.constant 0 : index
    %9 = vector.load %arg4[%c0_7, %c0_8, %c0_9] : memref<1x2x2xf32, #tpu.memory_space<vmem>>, vector<1x2x2xf32>
    %10 = vector.shape_cast %9 : vector<1x2x2xf32> to vector<2x2xf32>
    %11 = vector.shape_cast %8 : vector<2x2xf32> to vector<1x2x2xf32>
    tpu.vector_store %arg4[%c0_7, %c0_8, %c0_9], %11 {strides = array<i32>} : memref<1x2x2xf32, #tpu.memory_space<vmem>>, vector<1x2x2xf32>,
    %c0_10 = arith.constant 0 : index
    %c0_11 = arith.constant 0 : index
    %c0_12 = arith.constant 0 : index
    %12 = vector.load %arg5[%c0_10, %c0_11, %c0_12] : memref<1x2x2xf32, #tpu.memory_space<vmem>>, vector<1x2x2xf32>
    %13 = vector.shape_cast %12 : vector<1x2x2xf32> to vector<2x2xf32>
    %cst_13 = arith.constant dense<0.000000e+00> : vector<2x2xf32>
    %14 = tpu.matmul %4, %4, %cst_13 {dimension_numbers = #tpu.dot_dimension_numbers<[1], [1], [0], [0], [0, 0, 1, 0], [], []>, precision = #tpu.contract_precision<fp32>} : vector<2x1024xf32>, vector<2x1024xf32>, vector<2x2xf32> -> vector<2x2xf32>
    %15 = arith.addf %13, %14 : vector<2x2xf32>
    %c0_14 = arith.constant 0 : index
    %c0_15 = arith.constant 0 : index
    %c0_16 = arith.constant 0 : index
    %16 = vector.load %arg5[%c0_14, %c0_15, %c0_16] : memref<1x2x2xf32, #tpu.memory_space<vmem>>, vector<1x2x2xf32>
    %17 = vector.shape_cast %16 : vector<1x2x2xf32> to vector<2x2xf32>
    %18 = vector.shape_cast %15 : vector<2x2xf32> to vector<1x2x2xf32>
    tpu.vector_store %arg5[%c0_14, %c0_15, %c0_16], %18 {strides = array<i32>} : memref<1x2x2xf32, #tpu.memory_space<vmem>>, vector<1x2x2xf32>,
    return
  }
  func.func @transform_0(%arg0: i32, %arg1: i32) -> (i32, i32) {
    %c1_i32 = arith.constant 1 : i32
    %0 = arith.muli %arg0, %c1_i32 : i32
    %1 = arith.addi %0, %arg1 : i32
    %c0_i32 = arith.constant 0 : i32
    %c0_i32_0 = arith.constant 0 : i32
    return %c0_i32, %1 : i32, i32
  }
  func.func @transform_1(%arg0: i32, %arg1: i32) -> (i32, i32) {
    %c1_i32 = arith.constant 1 : i32
    %0 = arith.muli %arg0, %c1_i32 : i32
    %1 = arith.addi %0, %arg1 : i32
    %c0_i32 = arith.constant 0 : i32
    %c0_i32_0 = arith.constant 0 : i32
    return %c0_i32, %1 : i32, i32
  }
  func.func @transform_2(%arg0: i32, %arg1: i32) -> (i32, i32, i32) {
    %c0_i32 = arith.constant 0 : i32
    %c0_i32_0 = arith.constant 0 : i32
    %c0_i32_1 = arith.constant 0 : i32
    return %arg0, %c0_i32, %c0_i32_0 : i32, i32, i32
  }
  func.func @transform_3(%arg0: i32, %arg1: i32) -> (i32, i32, i32) {
    %c0_i32 = arith.constant 0 : i32
    %c0_i32_0 = arith.constant 0 : i32
    %c0_i32_1 = arith.constant 0 : i32
    return %arg0, %c0_i32, %c0_i32_0 : i32, i32, i32
  }
}

</mosaic_0001>

<bundles_post_ra>
// kernel: _batch_sim_loss_impl.1
= control target key start
LH: loop header
LB: loop body
LE: loop exit
PB: predicated region body
PF: predicated region fallthrough
CT: control target
= control target key end

     0   :  { %9 = vsyncpa [#allocation3], 0  ;;  %s4181_s0 = inlined_call_operand.hbm [shape: f32[2,1024], index: 0, kind: input, shape index: {}]   ;;  %s4182_s1 = inlined_call_operand.hbm [shape: f32[2,1024], index: 1, kind: input, shape index: {}]   ;;  %s4183_s2 = inlined_call_operand.vmem [shape: f32[1,2,2], index: 2, kind: output, shape index: {0}]   ;;  %s4184_s3 = inlined_call_operand.vmem [shape: f32[1,2,2], index: 3, kind: output, shape index: {1}]  }
   0x1   :  { %10 = vsyncpa [#allocation5], 0  ;;  %s3993_s12 = smov [#allocation2]   ;;  %s3994_s14 = smov [#allocation4]  }
   0x2   :  { %s21_s13 = sshll.u32 %s3993_s12, 4  ;;  %s35_s15 = sshll.u32 %s3994_s14, 4  ;;  %s22_s13 = int_to_ptr.vmem [resolvable:$true] %s21_s13  ;;  %s36_s15 = int_to_ptr.vmem [resolvable:$true] %s35_s15 }
   0x3   :  { %s3957_s16 = scalar_lea.vmem %s22_s13, 256  ;;  %p3962_p1 = scmp.lt.s32.totalorder %s22_s13, %s22_s13 }
   0x4   :  { %p3958_p0 = scmp.ne.s32.totalorder %s22_s13, %s3957_s16  ;;  %p3963_p2 = scmp.lt.s32.totalorder %s3957_s16, %s3957_s16 }
   0x6   :  { %p3964_p3 = por %p3963_p2, %p3962_p1 }
   0x8   :  { %p3965_p4 = pnand %p3964_p3, %p3958_p0 }
   0xa   :  { %3968 = shalt.err (!%p3965_p4)
}
   0xb   :  { %24 = dma.hbm_to_vmem [thread:$0]  %s4181_s0, 256, %s22_s13, [#allocation3]  }
   0xc   :  { %s3977_s19 = scalar_lea.vmem %s36_s15, 256  ;;  %p3982_p6 = scmp.lt.s32.totalorder %s36_s15, %s36_s15 }
   0xd   :  { %p3978_p5 = scmp.ne.s32.totalorder %s36_s15, %s3977_s19  ;;  %p3983_p7 = scmp.lt.s32.totalorder %s3977_s19, %s3977_s19 }
   0xf   :  { %p3984_p8 = por %p3983_p7, %p3982_p6 }
  0x11   :  { %p3985_p9 = pnand %p3984_p8, %p3978_p5 }
  0x13   :  { %3988 = shalt.err (!%p3985_p9)
}
  0x14   :  { %38 = dma.hbm_to_vmem [thread:$0]  %s4182_s1, 256, %s36_s15, [#allocation5]  }
  0x15   :  { %3989 = dma.done.wait [#allocation3], 256  }
  0x16   :  { %3990 = vsyncadd [#allocation3], 4294967040 }
  0x17   :  { %3991 = dma.done.wait [#allocation5], 256  }
  0x18   :  { %3992 = vsyncadd [#allocation5], 4294967040  ;;  %v67_v0 = vlaneseq  ;;  %v3995_v1 = vmov 1983009808   ;;  %v56_v6 = vld [vmem:[#allocation2] sm:$0xff]  ;;  %v57_v18 = vld [vmem:[#allocation2 + $0x8] sm:$0xff] }
  0x19   :  { %v65_v2 = vunpack.c.l.s4 %v3995_v1  ;;  %v63_v8 = vcombine.high %v56_v6, %v56_v6  ;;  %v80_v33 = vcombine.high %v57_v18, %v57_v18  ;;  %v58_v46 = vld [vmem:[#allocation4] sm:$0xff]  ;;  %vm53_vm0 = vcmask 9216  }
  0x1a   :  { %v68_v3 = vshrl.u32 %v67_v0, 7  ;;  %v1999_v59 = vcombine.high %v58_v46, %v58_v46 }
  0x1b   :  { %v66_v4 = vunpack.c.0.s8 %v65_v2 }
  0x1d   :  { %v4023_v5 = vsub.s32 %v66_v4, %v68_v3 }
  0x1f   :  { %v70_v7 = vrot.slane %v56_v6, %v4023_v5  ;;  %v77_v11 = vrot.slane %v63_v8, %v4023_v5  ;;  %v87_v23 = vrot.slane %v57_v18, %v4023_v5  ;;  %v94_v38 = vrot.slane %v80_v33, %v4023_v5 }
  0x20   :  { %v2006_v51 = vrot.slane %v58_v46, %v4023_v5  ;;  %v2013_v0 = vrot.slane %v1999_v59, %v4023_v5  ;;  %v3996_v46 = vmov 0.0  }
  0x21   :  { %v78_v9 = vcombine.high %v70_v7, %v70_v7  ;;  %v137_v10 = vand.u32 4294901760, %v70_v7  ;;  %v79_v14 = vcombine.high %v77_v11, %v77_v11  ;;  %v4029_v19 = vand.u32 4294901760, %v77_v11  ;;  %54 = vst.msk [vmem:[%s4183_s2] sm:$0x3] %vm53_vm0, %v3996_v46  ;;  %55 = vst.msk [vmem:[%s4184_s3] sm:$0x3] %vm53_vm0, %v3996_v46 }
  0x22   :  { %v95_v29 = vcombine.high %v87_v23, %v87_v23  ;;  %v4036_v35 = vand.u32 4294901760, %v87_v23  ;;  %v96_v42 = vcombine.high %v94_v38, %v94_v38  ;;  %v4049_v48 = vand.u32 4294901760, %v94_v38 }
  0x23   :  { %v135_v12 = vand.u32 4294901760, %v78_v9  ;;  %v178_v13 = vsub.f32 %v70_v7, %v137_v10  ;;  %v4027_v17 = vand.u32 4294901760, %v79_v14  ;;  %v650_v26 = vsub.f32 %v77_v11, %v4029_v19 }
  0x24   :  { %v4034_v32 = vand.u32 4294901760, %v95_v29  ;;  %v1122_v40 = vsub.f32 %v87_v23, %v4036_v35  ;;  %v4045_v45 = vand.u32 4294901760, %v96_v42  ;;  %v1594_v53 = vsub.f32 %v94_v38, %v4049_v48 }
  0x25   :  { %136 = vmatprep.subr.mxu0 %v135_v12  ;;  %v172_v15 = vsub.f32 %v78_v9, %v135_v12  ;;  %v179_v16 = vand.u32 4294901760, %v178_v13  ;;  %262 = vmatprep.mubr.f32.mxu1 %v135_v12  ;;  %v644_v22 = vsub.f32 %v79_v14, %v4027_v17  ;;  %v651_v30 = vand.u32 4294901760, %v650_v26  ;;  %v59_v9 = vld [vmem:[#allocation4 + $0x8] sm:$0xff] }
  0x26   :  { %138 = vmatpush1.xpose.msra.mxu0 %v137_v10  ;;  %v1116_v37 = vsub.f32 %v95_v29, %v4034_v32  ;;  %v1123_v43 = vand.u32 4294901760, %v1122_v40  ;;  %v1588_v50 = vsub.f32 %v96_v42, %v4045_v45  ;;  %v2014_v55 = vcombine.high %v2006_v51, %v2006_v51 }
  0x27   :  { %v173_v20 = vand.u32 4294901760, %v172_v15  ;;  %v180_v21 = vsub.f32 %v178_v13, %v179_v16  ;;  %301 = vmatprep.subr.mxu0 %v172_v15  ;;  %v645_v28 = vand.u32 4294901760, %v644_v22  ;;  %v652_v34 = vsub.f32 %v650_v26, %v651_v30 }
  0x28   :  { %v1117_v41 = vand.u32 4294901760, %v1116_v37  ;;  %v1124_v47 = vsub.f32 %v1122_v40, %v1123_v43  ;;  %v1589_v54 = vand.u32 4294901760, %v1588_v50  ;;  %v1595_v56 = vand.u32 4294901760, %v1594_v53 }
  0x29   :  { %v174_v24 = vsub.f32 %v172_v15, %v173_v20  ;;  %v181_v25 = vand.u32 4294901760, %v180_v21  ;;  %v646_v31 = vsub.f32 %v644_v22, %v645_v28  ;;  %v653_v39 = vand.u32 4294901760, %v652_v34 }
  0x2a   :  { %v1118_v44 = vsub.f32 %v1116_v37, %v1117_v41  ;;  %v1125_v52 = vand.u32 4294901760, %v1124_v47  ;;  %v1590_v57 = vsub.f32 %v1588_v50, %v1589_v54  ;;  %v4064_v58 = vand.u32 4294901760, %v2014_v55 }
  0x2b   :  { %v175_v27 = vand.u32 4294901760, %v174_v24  ;;  %v647_v36 = vand.u32 4294901760, %v646_v31  ;;  %v1596_v60 = vsub.f32 %v1594_v53, %v1595_v56  ;;  %v4068_v61 = vand.u32 4294901760, %v2006_v51 }
  0x2c   :  { %v1119_v49 = vand.u32 4294901760, %v1118_v44  ;;  %v1591_v62 = vand.u32 4294901760, %v1590_v57  ;;  %v2108_v63 = vsub.f32 %v2014_v55, %v4064_v58  ;;  %v2015_v4 = vcombine.high %v2013_v0, %v2013_v0 }
  0x2d   :  { %176 = vmatprep.mubr.f32.mxu0 %v175_v27  ;;  %222 = vmatprep.subr.mxu1 %v175_v27  ;;  %v1597_v1 = vand.u32 4294901760, %v1596_v60  ;;  %v2114_v2 = vsub.f32 %v2006_v51, %v4068_v61  ;;  %v4087_v11 = vand.u32 4294901760, %v2013_v0  ;;  %v2023_v14 = vrot.slane %v59_v9, %v4023_v5 }
  0x2e   :  { %182 = vmatmul.mubr.f32.vlgmr.msra.gmra.mxu0 %v181_v25  ;;  %228 = vmatpush1.xpose.msra.mxu1 %v181_v25  ;;  %v2109_v3 = vand.u32 4294901760, %v2108_v63  ;;  %v4083_v8 = vand.u32 4294901760, %v2015_v4 }
  0x2f   :  { %304 = vmatpush1.xpose.msra.mxu0 %v178_v13  ;;  %339 = vmatprep.mubr.f32.mxu0 %v172_v15  ;;  %v2115_v6 = vand.u32 4294901760, %v2114_v2  ;;  %v2031_v18 = vcombine.high %v2023_v14, %v2023_v14  ;;  %v4106_v24 = vand.u32 4294901760, %v2023_v14 }
  0x30   :  { %378 = vmatprep.subr.mxu1 %v135_v12  ;;  %458 = vmatprep.subr.mxu0 %v173_v20  ;;  %v2110_v7 = vsub.f32 %v2108_v63, %v2109_v3 }
  0x31   :  { %264 = vmatmul.mubr.f32.vlgmr.msra.gmra.mxu1 %v137_v10  ;;  %v4102_v21 = vand.u32 4294901760, %v2031_v18  ;;  %v3058_v29 = vsub.f32 %v2023_v14, %v4106_v24 }
  0x32   :  { %342 = vmatmul.mubr.f32.vlgmr.msra.gmra.mxu0 %v178_v13  ;;  %380 = vmatpush1.xpose.msra.mxu1 %v137_v10  ;;  %v2580_v13 = vsub.f32 %v2015_v4, %v4083_v8 }
  0x33   :  { %462 = vmatpush1.xpose.msra.mxu0 %v179_v16  ;;  %416 = vmatprep.mubr.f32.mxu1 %v173_v20 }
  0x34   :  { %496 = vmatprep.mubr.f32.mxu0 %v135_v12  ;;  %534 = vmatprep.subr.mxu1 %v135_v12 }
  0x35   :  { %420 = vmatmul.mubr.f32.vlgmr.msra.gmra.mxu1 %v179_v16  ;;  %608 = vmatprep.subr.mxu0 %v4027_v17  ;;  %v2586_v16 = vsub.f32 %v2013_v0, %v4087_v11 }
  0x36   :  { %498 = vmatmul.mubr.f32.vlgmr.msra.gmra.mxu0 %v137_v10  ;;  %536 = vmatpush1.xpose.msra.mxu1 %v137_v10 }
  0x37   :  { %610 = vmatpush1.xpose.msra.mxu0 %v4029_v19  ;;  %570 = vmatprep.mubr.f32.mxu1 %v135_v12  ;;  %v2111_v12 = vand.u32 4294901760, %v2110_v7 }
  0x38   :  { %648 = vmatprep.mubr.f32.mxu0 %v647_v36  ;;  %694 = vmatprep.subr.mxu1 %v647_v36 }
  0x39   :  { %572 = vmatmul.mubr.f32.vlgmr.msra.gmra.mxu1 %v137_v10  ;;  %773 = vmatprep.subr.mxu0 %v644_v22  ;;  %v2116_v10 = vsub.f32 %v2114_v2, %v2115_v6 }
  0x3a   :  { %654 = vmatmul.mubr.f32.vlgmr.msra.gmra.mxu0 %v653_v39  ;;  %700 = vmatpush1.xpose.msra.mxu1 %v653_v39 }
  0x3b   :  { %776 = vmatpush1.xpose.msra.mxu0 %v650_v26  ;;  %734 = vmatprep.mubr.f32.mxu1 %v4027_v17  ;;  %v2117_v15 = vand.u32 4294901760, %v2116_v10 }
  0x3c   :  { %811 = vmatprep.mubr.f32.mxu0 %v644_v22  ;;  %850 = vmatprep.subr.mxu1 %v4027_v17  ;;  %v2016_v22 = vcombine.high %v59_v9, %v59_v9 }
  0x3d   :  { %736 = vmatmul.mubr.f32.vlgmr.msra.gmra.mxu1 %v4029_v19  ;;  %930 = vmatprep.subr.mxu0 %v645_v28 }
  0x3e   :  { %814 = vmatmul.mubr.f32.vlgmr.msra.gmra.mxu0 %v650_v26  ;;  %852 = vmatpush1.xpose.msra.mxu1 %v4029_v19  ;;  %v3052_v26 = vsub.f32 %v2031_v18, %v4102_v21  ;;  %v2030_v27 = vrot.slane %v2016_v22, %v4023_v5  ;;  %v3059_v5 = vand.u32 4294901760, %v3058_v29 }
  0x3f   :  { %934 = vmatpush1.xpose.msra.mxu0 %v651_v30  ;;  %888 = vmatprep.mubr.f32.mxu1 %v645_v28 }
  0x40   :  { %968 = vmatprep.mubr.f32.mxu0 %v4027_v17  ;;  %1006 = vmatprep.subr.mxu1 %v4027_v17  ;;  %v2032_v31 = vcombine.high %v2030_v27, %v2030_v27  ;;  %v3060_v34 = vsub.f32 %v3058_v29, %v3059_v5 }
  0x41   :  { %892 = vmatmul.mubr.f32.vlgmr.msra.gmra.mxu1 %v651_v30  ;;  %1080 = vmatprep.subr.mxu0 %v4034_v32  ;;  %v3053_v30 = vand.u32 4294901760, %v3052_v26 }
  0x42   :  { %970 = vmatmul.mubr.f32.vlgmr.msra.gmra.mxu0 %v4029_v19  ;;  %1008 = vmatpush1.xpose.msra.mxu1 %v4029_v19  ;;  %v4121_v33 = vand.u32 4294901760, %v2032_v31  ;;  %v3061_v38 = vand.u32 4294901760, %v3060_v34 }
  0x43   :  { %1082 = vmatpush1.xpose.msra.mxu0 %v4036_v35  ;;  %1042 = vmatprep.mubr.f32.mxu1 %v4027_v17  ;;  %v2581_v17 = vand.u32 4294901760, %v2580_v13 }
  0x44   :  { %1120 = vmatprep.mubr.f32.mxu0 %v1119_v49  ;;  %1166 = vmatprep.subr.mxu1 %v1119_v49 }
  0x45   :  { %1044 = vmatmul.mubr.f32.vlgmr.msra.gmra.mxu1 %v4029_v19  ;;  %1245 = vmatprep.subr.mxu0 %v1116_v37  ;;  %v2587_v19 = vand.u32 4294901760, %v2586_v16  ;;  %v2582_v20 = vsub.f32 %v2580_v13, %v2581_v17 }
  0x46   :  { %1126 = vmatmul.mubr.f32.vlgmr.msra.gmra.mxu0 %v1125_v52  ;;  %1172 = vmatpush1.xpose.msra.mxu1 %v1125_v52 }
  0x47   :  { %1248 = vmatpush1.xpose.msra.mxu0 %v1122_v40  ;;  %1206 = vmatprep.mubr.f32.mxu1 %v4034_v32  ;;  %v2588_v23 = vsub.f32 %v2586_v16, %v2587_v19  ;;  %v2583_v25 = vand.u32 4294901760, %v2582_v20 }
  0x48   :  { %1283 = vmatprep.mubr.f32.mxu0 %v1116_v37  ;;  %1322 = vmatprep.subr.mxu1 %v4034_v32  ;;  %v3524_v37 = vsub.f32 %v2032_v31, %v4121_v33 }
  0x49   :  { %1208 = vmatmul.mubr.f32.vlgmr.msra.gmra.mxu1 %v4036_v35  ;;  %1402 = vmatprep.subr.mxu0 %v1117_v41  ;;  %v2589_v28 = vand.u32 4294901760, %v2588_v23 }
  0x4a   :  { %1286 = vmatmul.mubr.f32.vlgmr.msra.gmra.mxu0 %v1122_v40  ;;  %1324 = vmatpush1.xpose.msra.mxu1 %v4036_v35  ;;  %v3525_v40 = vand.u32 4294901760, %v3524_v37 }
  0x4b   :  { %1406 = vmatpush1.xpose.msra.mxu0 %v1123_v43  ;;  %1360 = vmatprep.mubr.f32.mxu1 %v1117_v41 }
  0x4c   :  { %1440 = vmatprep.mubr.f32.mxu0 %v4034_v32  ;;  %1478 = vmatprep.subr.mxu1 %v4034_v32  ;;  %v3526_v42 = vsub.f32 %v3524_v37, %v3525_v40 }
  0x4d   :  { %1364 = vmatmul.mubr.f32.vlgmr.msra.gmra.mxu1 %v1123_v43  ;;  %1552 = vmatprep.subr.mxu0 %v4045_v45 }
  0x4e   :  { %1442 = vmatmul.mubr.f32.vlgmr.msra.gmra.mxu0 %v4036_v35  ;;  %1480 = vmatpush1.xpose.msra.mxu1 %v4036_v35  ;;  %v3527_v44 = vand.u32 4294901760, %v3526_v42 }
  0x4f   :  { %1554 = vmatpush1.xpose.msra.mxu0 %v4049_v48  ;;  %1514 = vmatprep.mubr.f32.mxu1 %v4034_v32  ;;  %v3054_v32 = vsub.f32 %v3052_v26, %v3053_v30 }
  0x50   :  { %1592 = vmatprep.mubr.f32.mxu0 %v1591_v62  ;;  %1638 = vmatprep.subr.mxu1 %v1591_v62 }
  0x51   :  { %1516 = vmatmul.mubr.f32.vlgmr.msra.gmra.mxu1 %v4036_v35  ;;  %1717 = vmatprep.subr.mxu0 %v1588_v50  ;;  %v4125_v35 = vand.u32 4294901760, %v2030_v27  ;;  %v3055_v36 = vand.u32 4294901760, %v3054_v32 }
  0x52   :  { %1598 = vmatmul.mubr.f32.vlgmr.msra.gmra.mxu0 %v1597_v1  ;;  %1644 = vmatpush1.xpose.msra.mxu1 %v1597_v1 }
  0x53   :  { %1720 = vmatpush1.xpose.msra.mxu0 %v1594_v53  ;;  %1678 = vmatprep.mubr.f32.mxu1 %v4045_v45  ;;  %v3530_v39 = vsub.f32 %v2030_v27, %v4125_v35 }
  0x54   :  { %1755 = vmatprep.mubr.f32.mxu0 %v1588_v50  ;;  %1794 = vmatprep.subr.mxu1 %v4045_v45 }
  0x55   :  { %1680 = vmatmul.mubr.f32.vlgmr.msra.gmra.mxu1 %v4049_v48  ;;  %1874 = vmatprep.subr.mxu0 %v1589_v54  ;;  %v3531_v41 = vand.u32 4294901760, %v3530_v39 }
  0x56   :  { %1758 = vmatmul.mubr.f32.vlgmr.msra.gmra.mxu0 %v1594_v53  ;;  %1796 = vmatpush1.xpose.msra.mxu1 %v4049_v48 }
  0x57   :  { %1878 = vmatpush1.xpose.msra.mxu0 %v1595_v56  ;;  %1832 = vmatprep.mubr.f32.mxu1 %v1589_v54  ;;  %v3532_v43 = vsub.f32 %v3530_v39, %v3531_v41 }
  0x58   :  { %1912 = vmatprep.mubr.f32.mxu0 %v4045_v45  ;;  %1950 = vmatprep.subr.mxu1 %v4045_v45 }
  0x59   :  { %1836 = vmatmul.mubr.f32.vlgmr.msra.gmra.mxu1 %v1595_v56  ;;  %2072 = vmatprep.subr.mxu0 %v4064_v58 }
  0x5a   :  { %1914 = vmatmul.mubr.f32.vlgmr.msra.gmra.mxu0 %v4049_v48  ;;  %1952 = vmatpush1.xpose.msra.mxu1 %v4049_v48 }
  0x5b   :  { %2074 = vmatpush1.xpose.msra.mxu0 %v4068_v61  ;;  %1986 = vmatprep.mubr.f32.mxu1 %v4045_v45  ;;  %v3533_v45 = vand.u32 4294901760, %v3532_v43 }
  0x5c   :  { %2112 = vmatprep.mubr.f32.mxu0 %v2111_v12  ;;  %2158 = vmatprep.subr.mxu1 %v2111_v12 }
  0x5d   :  { %1988 = vmatmul.mubr.f32.vlgmr.msra.gmra.mxu1 %v4049_v48  ;;  %2237 = vmatprep.subr.mxu0 %v2108_v63 }
  0x5e   :  { %2118 = vmatmul.mubr.f32.vlgmr.msra.gmra.mxu0 %v2117_v15  ;;  %2164 = vmatpush1.xpose.msra.mxu1 %v2117_v15 }
  0x5f   :  { %2240 = vmatpush1.xpose.msra.mxu0 %v2114_v2  ;;  %2198 = vmatprep.mubr.f32.mxu1 %v4064_v58 }
  0x60   :  { %2275 = vmatprep.mubr.f32.mxu0 %v2108_v63  ;;  %2314 = vmatprep.subr.mxu1 %v4064_v58 }
  0x61   :  { %2200 = vmatmul.mubr.f32.vlgmr.msra.gmra.mxu1 %v4068_v61  ;;  %2394 = vmatprep.subr.mxu0 %v2109_v3 }
  0x62   :  { %2278 = vmatmul.mubr.f32.vlgmr.msra.gmra.mxu0 %v2114_v2  ;;  %2316 = vmatpush1.xpose.msra.mxu1 %v4068_v61 }
  0x63   :  { %2398 = vmatpush1.xpose.msra.mxu0 %v2115_v6  ;;  %2352 = vmatprep.mubr.f32.mxu1 %v2109_v3 }
  0x64   :  { %2432 = vmatprep.mubr.f32.mxu0 %v4064_v58  ;;  %2470 = vmatprep.subr.mxu1 %v4064_v58 }
  0x65   :  { %2356 = vmatmul.mubr.f32.vlgmr.msra.gmra.mxu1 %v2115_v6  ;;  %2544 = vmatprep.subr.mxu0 %v4083_v8 }
  0x66   :  { %2434 = vmatmul.mubr.f32.vlgmr.msra.gmra.mxu0 %v4068_v61  ;;  %2472 = vmatpush1.xpose.msra.mxu1 %v4068_v61 }
  0x67   :  { %2546 = vmatpush1.xpose.msra.mxu0 %v4087_v11  ;;  %2506 = vmatprep.mubr.f32.mxu1 %v4064_v58 }
  0x68   :  { %2584 = vmatprep.mubr.f32.mxu0 %v2583_v25  ;;  %2630 = vmatprep.subr.mxu1 %v2583_v25 }
  0x69   :  { %2508 = vmatmul.mubr.f32.vlgmr.msra.gmra.mxu1 %v4068_v61  ;;  %2709 = vmatprep.subr.mxu0 %v2580_v13 }
  0x6a   :  { %2590 = vmatmul.mubr.f32.vlgmr.msra.gmra.mxu0 %v2589_v28  ;;  %2636 = vmatpush1.xpose.msra.mxu1 %v2589_v28 }
  0x6b   :  { %2712 = vmatpush1.xpose.msra.mxu0 %v2586_v16  ;;  %2670 = vmatprep.mubr.f32.mxu1 %v4083_v8 }
  0x6c   :  { %2747 = vmatprep.mubr.f32.mxu0 %v2580_v13  ;;  %2786 = vmatprep.subr.mxu1 %v4083_v8 }
  0x6d   :  { %2672 = vmatmul.mubr.f32.vlgmr.msra.gmra.mxu1 %v4087_v11  ;;  %2866 = vmatprep.subr.mxu0 %v2581_v17 }
  0x6e   :  { %2750 = vmatmul.mubr.f32.vlgmr.msra.gmra.mxu0 %v2586_v16  ;;  %2788 = vmatpush1.xpose.msra.mxu1 %v4087_v11 }
  0x6f   :  { %2870 = vmatpush1.xpose.msra.mxu0 %v2587_v19  ;;  %2824 = vmatprep.mubr.f32.mxu1 %v2581_v17 }
  0x70   :  { %2904 = vmatprep.mubr.f32.mxu0 %v4083_v8  ;;  %2942 = vmatprep.subr.mxu1 %v4083_v8 }
  0x71   :  { %2828 = vmatmul.mubr.f32.vlgmr.msra.gmra.mxu1 %v2587_v19  ;;  %3016 = vmatprep.subr.mxu0 %v4102_v21 }
  0x72   :  { %2906 = vmatmul.mubr.f32.vlgmr.msra.gmra.mxu0 %v4087_v11  ;;  %2944 = vmatpush1.xpose.msra.mxu1 %v4087_v11 }
  0x73   :  { %3018 = vmatpush1.xpose.msra.mxu0 %v4106_v24  ;;  %2978 = vmatprep.mubr.f32.mxu1 %v4083_v8 }
  0x74   :  { %3056 = vmatprep.mubr.f32.mxu0 %v3055_v36  ;;  %3102 = vmatprep.subr.mxu1 %v3055_v36 }
  0x75   :  { %2980 = vmatmul.mubr.f32.vlgmr.msra.gmra.mxu1 %v4087_v11  ;;  %3181 = vmatprep.subr.mxu0 %v3052_v26 }
  0x76   :  { %3062 = vmatmul.mubr.f32.vlgmr.msra.gmra.mxu0 %v3061_v38  ;;  %3108 = vmatpush1.xpose.msra.mxu1 %v3061_v38 }
  0x77   :  { %3184 = vmatpush1.xpose.msra.mxu0 %v3058_v29  ;;  %3142 = vmatprep.mubr.f32.mxu1 %v4102_v21 }
  0x78   :  { %3219 = vmatprep.mubr.f32.mxu0 %v3052_v26  ;;  %3258 = vmatprep.subr.mxu1 %v4102_v21 }
  0x79   :  { %3144 = vmatmul.mubr.f32.vlgmr.msra.gmra.mxu1 %v4106_v24  ;;  %3338 = vmatprep.subr.mxu0 %v3053_v30 }
  0x7a   :  { %3222 = vmatmul.mubr.f32.vlgmr.msra.gmra.mxu0 %v3058_v29  ;;  %3260 = vmatpush1.xpose.msra.mxu1 %v4106_v24 }
  0x7b   :  { %3342 = vmatpush1.xpose.msra.mxu0 %v3059_v5  ;;  %3296 = vmatprep.mubr.f32.mxu1 %v3053_v30 }
  0x7c   :  { %3376 = vmatprep.mubr.f32.mxu0 %v4102_v21  ;;  %3414 = vmatprep.subr.mxu1 %v4102_v21 }
  0x7d   :  { %3300 = vmatmul.mubr.f32.vlgmr.msra.gmra.mxu1 %v3059_v5  ;;  %3488 = vmatprep.subr.mxu0 %v4121_v33 }
  0x7e   :  { %3378 = vmatmul.mubr.f32.vlgmr.msra.gmra.mxu0 %v4106_v24  ;;  %3416 = vmatpush1.xpose.msra.mxu1 %v4106_v24 }
  0x7f   :  { %3490 = vmatpush1.xpose.msra.mxu0 %v4125_v35  ;;  %3450 = vmatprep.mubr.f32.mxu1 %v4102_v21 }
  0x80   :  { %3528 = vmatprep.mubr.f32.mxu0 %v3527_v44  ;;  %3574 = vmatprep.subr.mxu1 %v3527_v44 }
  0x81   :  { %3452 = vmatmul.mubr.f32.vlgmr.msra.gmra.mxu1 %v4106_v24  ;;  %3653 = vmatprep.subr.mxu0 %v3524_v37 }
  0x82   :  { %3534 = vmatmul.mubr.f32.vlgmr.msra.gmra.mxu0 %v3533_v45  ;;  %3580 = vmatpush1.xpose.msra.mxu1 %v3533_v45 }
  0x83   :  { %3656 = vmatpush1.xpose.msra.mxu0 %v3530_v39  ;;  %3614 = vmatprep.mubr.f32.mxu1 %v4121_v33 }
  0x84   :  { %3691 = vmatprep.mubr.f32.mxu0 %v3524_v37  ;;  %3730 = vmatprep.subr.mxu1 %v4121_v33 }
  0x85   :  { %3616 = vmatmul.mubr.f32.vlgmr.msra.gmra.mxu1 %v4125_v35  ;;  %3810 = vmatprep.subr.mxu0 %v3525_v40 }
  0x86   :  { %3694 = vmatmul.mubr.f32.vlgmr.msra.gmra.mxu0 %v3530_v39  ;;  %3732 = vmatpush1.xpose.msra.mxu1 %v4125_v35 }
  0x87   :  { %3814 = vmatpush1.xpose.msra.mxu0 %v3531_v41  ;;  %3768 = vmatprep.mubr.f32.mxu1 %v3525_v40 }
  0x88   :  { %3848 = vmatprep.mubr.f32.mxu0 %v4121_v33  ;;  %3886 = vmatprep.subr.mxu1 %v4121_v33 }
  0x89   :  { %3772 = vmatmul.mubr.f32.vlgmr.msra.gmra.mxu1 %v3531_v41 }
  0x8a   :  { %3850 = vmatmul.mubr.f32.vlgmr.msra.gmra.mxu0 %v4125_v35  ;;  %3888 = vmatpush1.xpose.msra.mxu1 %v4125_v35 }
  0x8b   :  { %3922 = vmatprep.mubr.f32.mxu1 %v4121_v33 }
  0x8d   :  { %3924 = vmatmul.mubr.f32.vlgmr.msra.gmra.mxu1 %v4125_v35 }
  0xee   :  { %v183_v47 = vpop.f32.mrf.mxu0 }
  0xf0   :  { %v185_v48 = vpop.f32.mrf.mxu0 }
  0xf1   :  { %v265_v49 = vpop.f32.mrf.mxu1 }
  0xf2   :  { %v266_v50 = vadd.f32 %v265_v49, %v183_v47  ;;  %v343_v51 = vpop.f32.mrf.mxu0 }
  0xf3   :  { %v267_v52 = vpop.f32.mrf.mxu1 }
  0xf4   :  { %v344_v53 = vadd.f32 %v343_v51, %v266_v50  ;;  %v345_v54 = vpop.f32.mrf.mxu0  ;;  %v60_v51 = vld [vmem:[%s4183_s2] sm:$0x3] }
  0xf5   :  { %v421_v55 = vpop.f32.mrf.mxu1 }
  0xf6   :  { %v422_v56 = vadd.f32 %v421_v55, %v344_v53  ;;  %v499_v57 = vpop.f32.mrf.mxu0 }
  0xf7   :  { %v423_v58 = vpop.f32.mrf.mxu1 }
  0xf8   :  { %v500_v59 = vadd.f32 %v499_v57, %v422_v56  ;;  %v501_v60 = vpop.f32.mrf.mxu0 }
  0xf9   :  { %v573_v61 = vpop.f32.mrf.mxu1 }
  0xfa   :  { %v574_v62 = vadd.f32 %v573_v61, %v500_v59  ;;  %v655_v63 = vpop.f32.mrf.mxu0 }
  0xfb   :  { %v575_v0 = vpop.f32.mrf.mxu1 }
  0xfc   :  { %v656_v1 = vadd.f32 %v655_v63, %v574_v62  ;;  %v657_v2 = vpop.f32.mrf.mxu0 }
  0xfd   :  { %v737_v3 = vpop.f32.mrf.mxu1 }
  0xfe   :  { %v738_v4 = vadd.f32 %v737_v3, %v656_v1  ;;  %v815_v6 = vpop.f32.mrf.mxu0 }
  0xff   :  { %v739_v7 = vpop.f32.mrf.mxu1 }
 0x100   :  { %v816_v8 = vadd.f32 %v815_v6, %v738_v4  ;;  %v817_v9 = vpop.f32.mrf.mxu0 }
 0x101   :  { %v893_v10 = vpop.f32.mrf.mxu1 }
 0x102   :  { %v894_v11 = vadd.f32 %v893_v10, %v816_v8  ;;  %v971_v12 = vpop.f32.mrf.mxu0 }
 0x103   :  { %v895_v13 = vpop.f32.mrf.mxu1 }
 0x104   :  { %v972_v14 = vadd.f32 %v971_v12, %v894_v11  ;;  %v973_v15 = vpop.f32.mrf.mxu0 }
 0x105   :  { %v1045_v16 = vpop.f32.mrf.mxu1 }
 0x106   :  { %v1046_v17 = vadd.f32 %v1045_v16, %v972_v14  ;;  %v1127_v18 = vpop.f32.mrf.mxu0 }
 0x107   :  { %v1047_v19 = vpop.f32.mrf.mxu1 }
 0x108   :  { %v1128_v20 = vadd.f32 %v1127_v18, %v1046_v17  ;;  %v1129_v21 = vpop.f32.mrf.mxu0 }
 0x109   :  { %v1209_v22 = vpop.f32.mrf.mxu1 }
 0x10a   :  { %v1210_v23 = vadd.f32 %v1209_v22, %v1128_v20  ;;  %v1287_v24 = vpop.f32.mrf.mxu0 }
 0x10b   :  { %v1211_v25 = vpop.f32.mrf.mxu1 }
 0x10c   :  { %v1288_v26 = vadd.f32 %v1287_v24, %v1210_v23  ;;  %v1289_v27 = vpop.f32.mrf.mxu0 }
 0x10d   :  { %v1365_v28 = vpop.f32.mrf.mxu1 }
 0x10e   :  { %v1366_v29 = vadd.f32 %v1365_v28, %v1288_v26  ;;  %v1443_v30 = vpop.f32.mrf.mxu0 }
 0x10f   :  { %v1367_v31 = vpop.f32.mrf.mxu1 }
 0x110   :  { %v1444_v5 = vadd.f32 %v1443_v30, %v1366_v29  ;;  %v1445_v32 = vpop.f32.mrf.mxu0 }
 0x111   :  { %v1517_v33 = vpop.f32.mrf.mxu1 }
 0x112   :  { %v1518_v34 = vadd.f32 %v1517_v33, %v1444_v5  ;;  %v1599_v35 = vpop.f32.mrf.mxu0 }
 0x113   :  { %v1519_v36 = vpop.f32.mrf.mxu1 }
 0x114   :  { %v1600_v37 = vadd.f32 %v1599_v35, %v1518_v34  ;;  %v1601_v38 = vpop.f32.mrf.mxu0 }
 0x115   :  { %v1681_v39 = vpop.f32.mrf.mxu1 }
 0x116   :  { %v1682_v40 = vadd.f32 %v1681_v39, %v1600_v37  ;;  %v1759_v41 = vpop.f32.mrf.mxu0 }
 0x117   :  { %v1683_v42 = vpop.f32.mrf.mxu1 }
 0x118   :  { %v1760_v43 = vadd.f32 %v1759_v41, %v1682_v40  ;;  %v1761_v44 = vpop.f32.mrf.mxu0 }
 0x119   :  { %v1837_v45 = vpop.f32.mrf.mxu1 }
 0x11a   :  { %v1838_v46 = vadd.f32 %v1837_v45, %v1760_v43  ;;  %v1915_v47 = vpop.f32.mrf.mxu0 }
 0x11b   :  { %v1839_v48 = vpop.f32.mrf.mxu1 }
 0x11c   :  { %v1916_v49 = vadd.f32 %v1915_v47, %v1838_v46  ;;  %v1917_v50 = vpop.f32.mrf.mxu0 }
 0x11d   :  { %v1989_v52 = vpop.f32.mrf.mxu1 }
 0x11e   :  { %v1990_v53 = vadd.f32 %v1989_v52, %v1916_v49  ;;  %v2119_v54 = vpop.f32.mrf.mxu0 }
 0x11f   :  { %v1991_v55 = vpop.f32.mrf.mxu1 }
 0x120   :  { %v1993_v56 = vadd.f32 %v1990_v53, %v60_v51  ;;  %v2121_v57 = vpop.f32.mrf.mxu0 }
 0x121   :  { %v2201_v58 = vpop.f32.mrf.mxu1 }
 0x122   :  { %1995 = vst.msk [vmem:[%s4183_s2] sm:$0x3] %vm53_vm0, %v1993_v56  ;;  %v2202_v59 = vadd.f32 %v2201_v58, %v2119_v54  ;;  %v2279_v60 = vpop.f32.mrf.mxu0 }
 0x123   :  { %v2203_v61 = vpop.f32.mrf.mxu1 }
 0x124   :  { %v2280_v62 = vadd.f32 %v2279_v60, %v2202_v59  ;;  %v2281_v63 = vpop.f32.mrf.mxu0  ;;  %v1996_v60 = vld [vmem:[%s4184_s3] sm:$0x3] }
 0x125   :  { %v2357_v0 = vpop.f32.mrf.mxu1 }
 0x126   :  { %v2358_v1 = vadd.f32 %v2357_v0, %v2280_v62  ;;  %v2435_v2 = vpop.f32.mrf.mxu0 }
 0x127   :  { %v2359_v3 = vpop.f32.mrf.mxu1 }
 0x128   :  { %v2436_v4 = vadd.f32 %v2435_v2, %v2358_v1  ;;  %v2437_v6 = vpop.f32.mrf.mxu0 }
 0x129   :  { %v2509_v7 = vpop.f32.mrf.mxu1 }
 0x12a   :  { %v2510_v8 = vadd.f32 %v2509_v7, %v2436_v4  ;;  %v2591_v9 = vpop.f32.mrf.mxu0 }
 0x12b   :  { %v2511_v10 = vpop.f32.mrf.mxu1 }
 0x12c   :  { %v2592_v11 = vadd.f32 %v2591_v9, %v2510_v8  ;;  %v2593_v12 = vpop.f32.mrf.mxu0 }
 0x12d   :  { %v2673_v13 = vpop.f32.mrf.mxu1 }
 0x12e   :  { %v2674_v14 = vadd.f32 %v2673_v13, %v2592_v11  ;;  %v2751_v15 = vpop.f32.mrf.mxu0 }
 0x12f   :  { %v2675_v16 = vpop.f32.mrf.mxu1 }
 0x130   :  { %v2752_v17 = vadd.f32 %v2751_v15, %v2674_v14  ;;  %v2753_v18 = vpop.f32.mrf.mxu0 }
 0x131   :  { %v2829_v19 = vpop.f32.mrf.mxu1 }
 0x132   :  { %v2830_v20 = vadd.f32 %v2829_v19, %v2752_v17  ;;  %v2907_v21 = vpop.f32.mrf.mxu0 }
 0x133   :  { %v2831_v22 = vpop.f32.mrf.mxu1 }
 0x134   :  { %v2908_v23 = vadd.f32 %v2907_v21, %v2830_v20  ;;  %v2909_v24 = vpop.f32.mrf.mxu0 }
 0x135   :  { %v2981_v25 = vpop.f32.mrf.mxu1 }
 0x136   :  { %v2982_v26 = vadd.f32 %v2981_v25, %v2908_v23  ;;  %v3063_v27 = vpop.f32.mrf.mxu0 }
 0x137   :  { %v2983_v28 = vpop.f32.mrf.mxu1 }
 0x138   :  { %v3064_v29 = vadd.f32 %v3063_v27, %v2982_v26  ;;  %v3065_v30 = vpop.f32.mrf.mxu0 }
 0x139   :  { %v3145_v31 = vpop.f32.mrf.mxu1 }
 0x13a   :  { %v3146_v5 = vadd.f32 %v3145_v31, %v3064_v29  ;;  %v3223_v32 = vpop.f32.mrf.mxu0 }
 0x13b   :  { %v3147_v33 = vpop.f32.mrf.mxu1 }
 0x13c   :  { %v3224_v34 = vadd.f32 %v3223_v32, %v3146_v5  ;;  %v3225_v35 = vpop.f32.mrf.mxu0 }
 0x13d   :  { %v3301_v36 = vpop.f32.mrf.mxu1 }
 0x13e   :  { %v3302_v37 = vadd.f32 %v3301_v36, %v3224_v34  ;;  %v3379_v38 = vpop.f32.mrf.mxu0 }
 0x13f   :  { %v3303_v39 = vpop.f32.mrf.mxu1 }
 0x140   :  { %v3380_v40 = vadd.f32 %v3379_v38, %v3302_v37  ;;  %v3381_v41 = vpop.f32.mrf.mxu0 }
 0x141   :  { %v3453_v42 = vpop.f32.mrf.mxu1 }
 0x142   :  { %v3454_v43 = vadd.f32 %v3453_v42, %v3380_v40  ;;  %v3535_v44 = vpop.f32.mrf.mxu0 }
 0x143   :  { %v3455_v45 = vpop.f32.mrf.mxu1 }
 0x144   :  { %v3536_v46 = vadd.f32 %v3535_v44, %v3454_v43  ;;  %v3537_v47 = vpop.f32.mrf.mxu0 }
 0x145   :  { %v3617_v48 = vpop.f32.mrf.mxu1 }
 0x146   :  { %v3618_v49 = vadd.f32 %v3617_v48, %v3536_v46  ;;  %v3695_v50 = vpop.f32.mrf.mxu0 }
 0x147   :  { %v3619_v51 = vpop.f32.mrf.mxu1 }
 0x148   :  { %v3696_v52 = vadd.f32 %v3695_v50, %v3618_v49  ;;  %v3697_v53 = vpop.f32.mrf.mxu0 }
 0x149   :  { %v3773_v54 = vpop.f32.mrf.mxu1 }
 0x14a   :  { %v3774_v55 = vadd.f32 %v3773_v54, %v3696_v52  ;;  %v3851_v56 = vpop.f32.mrf.mxu0 }
 0x14b   :  { %v3775_v57 = vpop.f32.mrf.mxu1 }
 0x14c   :  { %v3852_v58 = vadd.f32 %v3851_v56, %v3774_v55  ;;  %v3853_v59 = vpop.f32.mrf.mxu0 }
 0x14d   :  { %v3925_v61 = vpop.f32.mrf.mxu1 }
 0x14e   :  { %v3926_v62 = vadd.f32 %v3925_v61, %v3852_v58 }
 0x14f   :  { %v3927_v63 = vpop.f32.mrf.mxu1 }
 0x150   :  { %v3929_v0 = vadd.f32 %v3926_v62, %v1996_v60 }
 0x152   :  { %3930 = vst.msk [vmem:[%s4184_s3] sm:$0x3] %vm53_vm0, %v3929_v0 }
 0x153   :  { %3939 = vsyncpa [#allocation3], 1 }
 0x154   :  { %3940 = vsyncpa [#allocation5], 1 }

</bundles_post_ra>
